<compile_context>
chip_gen: v7x
topology: tpu7x:2x2x1
jax: 0.10.0
libtpu: 0.0.40
codegen_flags: <defaults>
</compile_context>

<pallas_src>
from functools import partial

import jax
import jax.numpy as jnp
from jax import lax
from jax.experimental import pallas as pl
from jax.experimental.pallas import tpu as pltpu

MARGIN = 0.5
TILE = 256          # TM = TN; sized for v7x's 64 MiB VMEM with headroom.


def _online_contrastive_kernel(ei_ref, ejt_ref, ni_ref, nj_ref, li_ref, lj_ref,
                               out_ref, acc_ref, *, batch, tile, margin):
    i = pl.program_id(0)
    j = pl.program_id(1)

    @pl.when(j == 0)
    def _init():
        acc_ref[...] = jnp.zeros_like(acc_ref)

    # Skip tiles strictly below the diagonal: with square tiles all of their
    # pairs have col <= row, so they contribute nothing (halves the work).
    @pl.when(j >= i)
    def _compute():
        # Plain NN matmul on the MXU (RHS pre-transposed in the wrapper).
        gram = jnp.dot(ei_ref[...], ejt_ref[...],
                       preferred_element_type=jnp.float32)          # (TM, TN)
        d2 = ni_ref[...] + nj_ref[...] - 2.0 * gram                 # ||ei-ej||^2
        d2 = jnp.maximum(d2, 0.0)

        same = li_ref[...] == lj_ref[...]                           # (TM, TN)

        row = lax.broadcasted_iota(jnp.int32, (tile, tile), 0) + i * tile
        col = lax.broadcasted_iota(jnp.int32, (tile, tile), 1) + j * tile
        valid = (col > row) & (row < batch) & (col < batch)

        # positive_loss = ||ei - ej||^2                (same label)
        pos = jnp.where(valid & same, d2, 0.0)
        # negative_loss = relu(margin - ||ei - ej||)^2 (different label)
        hinge = jnp.maximum(margin - jnp.sqrt(d2), 0.0)
        neg = jnp.where(valid & jnp.logical_not(same), hinge * hinge, 0.0)

        acc_ref[...] += pos + neg

    @pl.when(j == pl.num_programs(1) - 1)
    def _finalize():
        total = jnp.sum(acc_ref[...])
        sub = lax.broadcasted_iota(jnp.int32, (1, 8, 128), 1)
        lane = lax.broadcasted_iota(jnp.int32, (1, 8, 128), 2)
        out_ref[...] = jnp.where((sub == 0) & (lane == 0), total, 0.0)


def online_contrastive_loss(embeddings, target, margin=MARGIN, tile=TILE):
    """embeddings: (B, D) float, target: (B,) int -> scalar float32."""
    B, D = embeddings.shape
    dtype = embeddings.dtype

    b_pad = ((B + tile - 1) // tile) * tile
    d_pad = ((D + 127) // 128) * 128          # keep the contraction lane-dense
    # TODO(synk): D is kept untiled (fits VMEM for typical embedding dims);
    #             very large D would need a third (K) grid axis + gram scratch.

    # Zero-pad; zero rows/cols are masked out inside the kernel.
    e = jnp.zeros((b_pad, d_pad), dtype).at[:B, :D].set(embeddings)
    e_t = e.T                                  # (D, B) column operand, once.

    sq = jnp.sum(e.astype(jnp.float32) * e.astype(jnp.float32), axis=1)
    ni = sq.reshape(b_pad, 1)
    nj = sq.reshape(1, b_pad)

    lab = jnp.full((b_pad,), -1, jnp.int32).at[:B].set(target.astype(jnp.int32))
    li = lab.reshape(b_pad, 1)
    lj = lab.reshape(1, b_pad)

    n_i = b_pad // tile
    n_j = b_pad // tile

    kernel = partial(_online_contrastive_kernel,
                     batch=B, tile=tile, margin=float(margin))

    partials = pl.pallas_call(
        kernel,
        out_shape=jax.ShapeDtypeStruct((n_i, 8, 128), jnp.float32),
        grid_spec=pltpu.PrefetchScalarGridSpec(
            num_scalar_prefetch=0,
            grid=(n_i, n_j),
            in_specs=[
                pl.BlockSpec((tile, d_pad), lambda i, j: (i, 0)),   # row block
                pl.BlockSpec((d_pad, tile), lambda i, j: (0, j)),   # col block (pre-T)
                pl.BlockSpec((tile, 1), lambda i, j: (i, 0)),       # row norms
                pl.BlockSpec((1, tile), lambda i, j: (0, j)),       # col norms
                pl.BlockSpec((tile, 1), lambda i, j: (i, 0)),       # row labels
                pl.BlockSpec((1, tile), lambda i, j: (0, j)),       # col labels
            ],
            out_specs=pl.BlockSpec((1, 8, 128), lambda i, j: (i, 0, 0)),
            scratch_shapes=[pltpu.VMEM((tile, tile), jnp.float32)],
        ),
        compiler_params=pltpu.CompilerParams(
            dimension_semantics=("parallel", "arbitrary"),
            vmem_limit_bytes=64 * 1024 * 1024,
        ),
    )(e, e_t, ni, nj, li, lj)

    n_pairs = B * (B - 1) // 2
    return jnp.sum(partials) / jnp.float32(n_pairs)


def _reference(embeddings, target, margin=MARGIN):
    """Pure-JAX reference mirroring the PyTorch forward (all-pairs selector)."""
    B = embeddings.shape[0]
    e = embeddings.astype(jnp.float32)
    diff = e[:, None, :] - e[None, :, :]
    d2 = jnp.sum(diff * diff, axis=-1)
    same = target[:, None] == target[None, :]
    iu, ju = jnp.triu_indices(B, k=1)
    pos_loss = d2[iu, ju]
    neg_loss = jnp.maximum(margin - jnp.sqrt(d2[iu, ju]), 0.0) ** 2
    losses = jnp.where(same[iu, ju], pos_loss, neg_loss)
    return jnp.mean(losses)


if __name__ == "__main__":
    key = jax.random.PRNGKey(0)
    k_emb, k_lab = jax.random.split(key)
    B, D = 8, 32
    embeddings = jax.random.normal(k_emb, (B, D), dtype=jnp.float32)
    target = jax.random.randint(k_lab, (B,), 0, 3, dtype=jnp.int32)

    loss = online_contrastive_loss(embeddings, target)
    loss = jax.block_until_ready(loss)

    ref = _reference(embeddings, target)
    assert jnp.allclose(loss, ref, rtol=1e-5, atol=1e-5), (loss, ref)
    print("KERNEL_OK")
</pallas_src>

<mosaic_0001>
module attributes {stable_mosaic.version = 11 : i64} {
  func.func @_online_contrastive_kernel(%arg0: i32, %arg1: i32, %arg2: memref<256x128xf32, #tpu.memory_space<vmem>>, %arg3: memref<128x256xf32, #tpu.memory_space<vmem>>, %arg4: memref<256x1xf32, #tpu.memory_space<vmem>>, %arg5: memref<1x256xf32, #tpu.memory_space<vmem>>, %arg6: memref<256x1xi32, #tpu.memory_space<vmem>>, %arg7: memref<1x256xi32, #tpu.memory_space<vmem>>, %arg8: memref<1x8x128xf32, #tpu.memory_space<vmem>>, %arg9: memref<256x256xf32, #tpu.memory_space<vmem>>) attributes {dimension_semantics = [#tpu.dimension_semantics<parallel>, #tpu.dimension_semantics<arbitrary>], iteration_bounds = array<i64: 1, 1>, scalar_prefetch = 0 : i64, scratch_operands = 1 : i64, tpu.core_type = #tpu.core_type<tc>, window_params = [{transform_indices = @transform_0, window_bounds = array<i64: 256, 128>}, {transform_indices = @transform_1, window_bounds = array<i64: 128, 256>}, {transform_indices = @transform_2, window_bounds = array<i64: 256, 1>}, {transform_indices = @transform_3, window_bounds = array<i64: 1, 256>}, {transform_indices = @transform_4, window_bounds = array<i64: 256, 1>}, {transform_indices = @transform_5, window_bounds = array<i64: 1, 256>}, {transform_indices = @transform_6, window_bounds = array<i64: 1, 8, 128>}]} {
    %c0_i32 = arith.constant 0 : i32
    %0 = arith.cmpi eq, %arg1, %c0_i32 : i32
    %1 = arith.extui %0 : i1 to i32
    %c0_i32_0 = arith.constant 0 : i32
    %2 = arith.cmpi ne, %1, %c0_i32_0 : i32
    scf.if %2 {
      %cst = arith.constant 0.000000e+00 : f32
      %9 = vector.broadcast %cst : f32 to vector<256x256xf32>
      %c0 = arith.constant 0 : index
      %c0_4 = arith.constant 0 : index
      %10 = vector.load %arg9[%c0, %c0_4] : memref<256x256xf32, #tpu.memory_space<vmem>>, vector<256x256xf32>
      tpu.vector_store %arg9[%c0, %c0_4], %9 {strides = array<i32>} : memref<256x256xf32, #tpu.memory_space<vmem>>, vector<256x256xf32>,
    } else {
    }
    %3 = arith.cmpi sge, %arg1, %arg0 : i32
    %4 = arith.extui %3 : i1 to i32
    %c0_i32_1 = arith.constant 0 : i32
    %5 = arith.cmpi ne, %4, %c0_i32_1 : i32
    scf.if %5 {
      %c0 = arith.constant 0 : index
      %c0_4 = arith.constant 0 : index
      %9 = vector.load %arg2[%c0, %c0_4] : memref<256x128xf32, #tpu.memory_space<vmem>>, vector<256x128xf32>
      %c0_5 = arith.constant 0 : index
      %c0_6 = arith.constant 0 : index
      %10 = vector.load %arg3[%c0_5, %c0_6] : memref<128x256xf32, #tpu.memory_space<vmem>>, vector<128x256xf32>
      %cst = arith.constant dense<0.000000e+00> : vector<256x256xf32>
      %11 = tpu.matmul %9, %10, %cst {dimension_numbers = #tpu.dot_dimension_numbers<[1], [0], [0], [1], [0, 0, 1, 1], [], []>} : vector<256x128xf32>, vector<128x256xf32>, vector<256x256xf32> -> vector<256x256xf32>
      %c0_7 = arith.constant 0 : index
      %c0_8 = arith.constant 0 : index
      %12 = vector.load %arg4[%c0_7, %c0_8] : memref<256x1xf32, #tpu.memory_space<vmem>>, vector<256x1xf32>
      %c0_9 = arith.constant 0 : index
      %c0_10 = arith.constant 0 : index
      %13 = vector.load %arg5[%c0_9, %c0_10] : memref<1x256xf32, #tpu.memory_space<vmem>>, vector<1x256xf32>
      %14 = vector.broadcast %12 : vector<256x1xf32> to vector<256x256xf32>
      %15 = vector.broadcast %13 : vector<1x256xf32> to vector<256x256xf32>
      %16 = arith.addf %14, %15 : vector<256x256xf32>
      %cst_11 = arith.constant 2.000000e+00 : f32
      %17 = vector.broadcast %cst_11 : f32 to vector<256x256xf32>
      %18 = arith.mulf %17, %11 : vector<256x256xf32>
      %19 = arith.subf %16, %18 : vector<256x256xf32>
      %cst_12 = arith.constant 0.000000e+00 : f32
      %20 = vector.broadcast %cst_12 : f32 to vector<256x256xf32>
      %21 = arith.maximumf %19, %20 : vector<256x256xf32>
      %c0_13 = arith.constant 0 : index
      %c0_14 = arith.constant 0 : index
      %22 = vector.load %arg6[%c0_13, %c0_14] : memref<256x1xi32, #tpu.memory_space<vmem>>, vector<256x1xi32>
      %c0_15 = arith.constant 0 : index
      %c0_16 = arith.constant 0 : index
      %23 = vector.load %arg7[%c0_15, %c0_16] : memref<1x256xi32, #tpu.memory_space<vmem>>, vector<1x256xi32>
      %24 = vector.broadcast %22 : vector<256x1xi32> to vector<256x256xi32>
      %25 = vector.broadcast %23 : vector<1x256xi32> to vector<256x256xi32>
      %26 = arith.cmpi eq, %24, %25 : vector<256x256xi32>
      %27 = tpu.iota {dimensions = array<i32: 0>} : vector<256x256xi32>
      %c256_i32 = arith.constant 256 : i32
      %28 = arith.muli %arg0, %c256_i32 : i32
      %29 = vector.broadcast %28 : i32 to vector<256x256xi32>
      %30 = arith.addi %27, %29 : vector<256x256xi32>
      %31 = tpu.iota {dimensions = array<i32: 1>} : vector<256x256xi32>
      %c256_i32_17 = arith.constant 256 : i32
      %32 = arith.muli %arg1, %c256_i32_17 : i32
      %33 = vector.broadcast %32 : i32 to vector<256x256xi32>
      %34 = arith.addi %31, %33 : vector<256x256xi32>
      %35 = arith.cmpi sgt, %34, %30 : vector<256x256xi32>
      %c8_i32 = arith.constant 8 : i32
      %36 = vector.broadcast %c8_i32 : i32 to vector<256x256xi32>
      %37 = arith.cmpi slt, %30, %36 : vector<256x256xi32>
      %38 = arith.andi %35, %37 : vector<256x256xi1>
      %c8_i32_18 = arith.constant 8 : i32
      %39 = vector.broadcast %c8_i32_18 : i32 to vector<256x256xi32>
      %40 = arith.cmpi slt, %34, %39 : vector<256x256xi32>
      %41 = arith.andi %38, %40 : vector<256x256xi1>
      %42 = arith.andi %41, %26 : vector<256x256xi1>
      %cst_19 = arith.constant 0.000000e+00 : f32
      %43 = vector.broadcast %cst_19 : f32 to vector<256x256xf32>
      %44 = arith.select %42, %21, %43 : vector<256x256xi1>, vector<256x256xf32>
      %45 = math.sqrt %21 : vector<256x256xf32>
      %cst_20 = arith.constant 5.000000e-01 : f32
      %46 = vector.broadcast %cst_20 : f32 to vector<256x256xf32>
      %47 = arith.subf %46, %45 : vector<256x256xf32>
      %cst_21 = arith.constant 0.000000e+00 : f32
      %48 = vector.broadcast %cst_21 : f32 to vector<256x256xf32>
      %49 = arith.maximumf %47, %48 : vector<256x256xf32>
      %cst_22 = arith.constant dense<true> : vector<256x256xi1>
      %50 = arith.xori %26, %cst_22 : vector<256x256xi1>
      %51 = arith.andi %41, %50 : vector<256x256xi1>
      %52 = arith.mulf %49, %49 : vector<256x256xf32>
      %cst_23 = arith.constant 0.000000e+00 : f32
      %53 = vector.broadcast %cst_23 : f32 to vector<256x256xf32>
      %54 = arith.select %51, %52, %53 : vector<256x256xi1>, vector<256x256xf32>
      %c0_24 = arith.constant 0 : index
      %c0_25 = arith.constant 0 : index
      %55 = vector.load %arg9[%c0_24, %c0_25] : memref<256x256xf32, #tpu.memory_space<vmem>>, vector<256x256xf32>
      %56 = arith.addf %44, %54 : vector<256x256xf32>
      %57 = arith.addf %55, %56 : vector<256x256xf32>
      %c0_26 = arith.constant 0 : index
      %c0_27 = arith.constant 0 : index
      %58 = vector.load %arg9[%c0_26, %c0_27] : memref<256x256xf32, #tpu.memory_space<vmem>>, vector<256x256xf32>
      tpu.vector_store %arg9[%c0_26, %c0_27], %57 {strides = array<i32>} : memref<256x256xf32, #tpu.memory_space<vmem>>, vector<256x256xf32>,
    } else {
    }
    %c0_i32_2 = arith.constant 0 : i32
    %6 = arith.cmpi eq, %arg1, %c0_i32_2 : i32
    %7 = arith.extui %6 : i1 to i32
    %c0_i32_3 = arith.constant 0 : i32
    %8 = arith.cmpi ne, %7, %c0_i32_3 : i32
    scf.if %8 {
      %c0 = arith.constant 0 : index
      %c0_4 = arith.constant 0 : index
      %9 = vector.load %arg9[%c0, %c0_4] : memref<256x256xf32, #tpu.memory_space<vmem>>, vector<256x256xf32>
      %10 = vector.shape_cast %9 : vector<256x256xf32> to vector<1x256x256xf32>
      %cst = arith.constant dense<0.000000e+00> : vector<1xf32>
      %11 = vector.multi_reduction <add>, %10, %cst [1, 2] : vector<1x256x256xf32> to vector<1xf32>
      %12 = vector.shape_cast %11 : vector<1xf32> to vector<1x1x1xf32>
      %13 = vector.extract %12[0, 0, 0] : f32 from vector<1x1x1xf32>
      %14 = tpu.iota {dimensions = array<i32: 1>} : vector<1x8x128xi32>
      %15 = tpu.iota {dimensions = array<i32: 2>} : vector<1x8x128xi32>
      %c0_i32_5 = arith.constant 0 : i32
      %16 = vector.broadcast %c0_i32_5 : i32 to vector<1x8x128xi32>
      %17 = arith.cmpi eq, %14, %16 : vector<1x8x128xi32>
      %c0_i32_6 = arith.constant 0 : i32
      %18 = vector.broadcast %c0_i32_6 : i32 to vector<1x8x128xi32>
      %19 = arith.cmpi eq, %15, %18 : vector<1x8x128xi32>
      %20 = arith.andi %17, %19 : vector<1x8x128xi1>
      %cst_7 = arith.constant 0.000000e+00 : f32
      %21 = vector.broadcast %13 : f32 to vector<1x8x128xf32>
      %22 = vector.broadcast %cst_7 : f32 to vector<1x8x128xf32>
      %23 = arith.select %20, %21, %22 : vector<1x8x128xi1>, vector<1x8x128xf32>
      %c0_8 = arith.constant 0 : index
      %c0_9 = arith.constant 0 : index
      %c0_10 = arith.constant 0 : index
      %24 = vector.load %arg8[%c0_8, %c0_9, %c0_10] : memref<1x8x128xf32, #tpu.memory_space<vmem>>, vector<1x8x128xf32>
      tpu.vector_store %arg8[%c0_8, %c0_9, %c0_10], %23 {strides = array<i32>} : memref<1x8x128xf32, #tpu.memory_space<vmem>>, vector<1x8x128xf32>,
    } else {
    }
    return
  }
  func.func @transform_0(%arg0: i32, %arg1: i32) -> (i32, i32) {
    %c0_i32 = arith.constant 0 : i32
    %c0_i32_0 = arith.constant 0 : i32
    return %arg0, %c0_i32 : i32, i32
  }
  func.func @transform_1(%arg0: i32, %arg1: i32) -> (i32, i32) {
    %c0_i32 = arith.constant 0 : i32
    %c0_i32_0 = arith.constant 0 : i32
    return %c0_i32, %arg1 : i32, i32
  }
  func.func @transform_2(%arg0: i32, %arg1: i32) -> (i32, i32) {
    %c0_i32 = arith.constant 0 : i32
    %c0_i32_0 = arith.constant 0 : i32
    return %arg0, %c0_i32 : i32, i32
  }
  func.func @transform_3(%arg0: i32, %arg1: i32) -> (i32, i32) {
    %c0_i32 = arith.constant 0 : i32
    %c0_i32_0 = arith.constant 0 : i32
    return %c0_i32, %arg1 : i32, i32
  }
  func.func @transform_4(%arg0: i32, %arg1: i32) -> (i32, i32) {
    %c0_i32 = arith.constant 0 : i32
    %c0_i32_0 = arith.constant 0 : i32
    return %arg0, %c0_i32 : i32, i32
  }
  func.func @transform_5(%arg0: i32, %arg1: i32) -> (i32, i32) {
    %c0_i32 = arith.constant 0 : i32
    %c0_i32_0 = arith.constant 0 : i32
    return %c0_i32, %arg1 : i32, i32
  }
  func.func @transform_6(%arg0: i32, %arg1: i32) -> (i32, i32, i32) {
    %c0_i32 = arith.constant 0 : i32
    %c0_i32_0 = arith.constant 0 : i32
    %c0_i32_1 = arith.constant 0 : i32
    return %arg0, %c0_i32, %c0_i32_0 : i32, i32, i32
  }
}

</mosaic_0001>

<bundles_post_ra>
// kernel: tpu_custom_call.1
= control target key start
LH: loop header
LB: loop body
LE: loop exit
PB: predicated region body
PF: predicated region fallthrough
CT: control target
= control target key end

     0   :  { %11 = vsyncpa [#allocation4], 0  ;;  %s3254_s0 = inlined_call_operand.hbm [shape: f32[256,128], index: 0, kind: input, shape index: {}]   ;;  %s3255_s1 = inlined_call_operand.hbm [shape: f32[128,256], index: 1, kind: input, shape index: {}]   ;;  %s3256_s2 = inlined_call_operand.hbm [shape: f32[256,1], index: 2, kind: input, shape index: {}]   ;;  %s3257_s3 = inlined_call_operand.hbm [shape: f32[1,256], index: 3, kind: input, shape index: {}]   ;;  %s3258_s4 = inlined_call_operand.hbm [shape: s32[256,1], index: 4, kind: input, shape index: {}]   ;;  %s3259_s5 = inlined_call_operand.hbm [shape: s32[1,256], index: 5, kind: input, shape index: {}]   ;;  %s3260_s6 = inlined_call_operand.hbm [shape: f32[1,8,128], index: 6, kind: output, shape index: {}]  }
   0x1   :  { %12 = vsyncpa [#allocation7], 0 }
   0x2   :  { %13 = vsyncpa [#allocation10], 0 }
   0x3   :  { %14 = vsyncpa [#allocation13], 0 }
   0x4   :  { %15 = vsyncpa [#allocation5], 0  ;;  %s3070_s21 = smov [#allocation6]   ;;  %s2906_s25 = scalar_lea.hbm %s3255_s1, 4096 }
   0x5   :  { %s33_s22 = sshll.u32 %s3070_s21, 4  ;;  %p2907_p0 = scmp.ne.s32.totalorder %s3255_s1, %s2906_s25  ;;  %s34_s22 = int_to_ptr.vmem [resolvable:$true] %s33_s22 }
   0x6   :  { %p2910_p1 = scmp.lt.u32.totalorder %s2906_s25, %s3255_s1 }
   0x8   :  { %p2912_p2 = pnand %p2910_p1, %p2907_p0 }
   0xa   :  { %2915 = shalt.err (!%p2912_p2)
}
   0xb   :  { %s2916_s30 = scalar_lea.vmem %s34_s22, 4096  ;;  %p2921_p4 = scmp.lt.s32.totalorder %s34_s22, %s34_s22 }
   0xc   :  { %p2917_p3 = scmp.ne.s32.totalorder %s34_s22, %s2916_s30  ;;  %p2922_p5 = scmp.lt.s32.totalorder %s2916_s30, %s2916_s30 }
   0xe   :  { %p2923_p6 = por %p2922_p5, %p2921_p4 }
  0x10   :  { %p2924_p7 = pnand %p2923_p6, %p2917_p3 }
  0x12   :  { %2927 = shalt.err (!%p2924_p7)
}
  0x13   :  { %s3071_s7 = smov 256   ;;  %s3072_s8 = smov 16  }
  0x14   :  { %39 = dma.hbm_to_vmem [thread:$0]  %s3255_s1, 4096, %s34_s22, [#allocation7], %s3071_s7, %s3071_s7, %s3072_s8  }
  0x15   :  { %s3073_s11 = smov [#allocation9]   ;;  %s3074_s13 = smov [#allocation3]  }
  0x16   :  { %s58_s12 = sshll.u32 %s3073_s11, 4  ;;  %s21_s14 = sshll.u32 %s3074_s13, 4  ;;  %s59_s12 = int_to_ptr.vmem [resolvable:$true] %s58_s12  ;;  %s22_s14 = int_to_ptr.vmem [resolvable:$true] %s21_s14 }
  0x17   :  { %s2928_s17 = scalar_lea.hbm %s3257_s3, 32 }
  0x18   :  { %p2929_p8 = scmp.ne.s32.totalorder %s3257_s3, %s2928_s17  ;;  %p2932_p9 = scmp.lt.u32.totalorder %s2928_s17, %s3257_s3 }
  0x1a   :  { %p2934_p10 = pnand %p2932_p9, %p2929_p8 }
  0x1c   :  { %2937 = shalt.err (!%p2934_p10)
}
  0x1d   :  { %s2938_s1 = scalar_lea.vmem %s59_s12, 32  ;;  %p2943_p12 = scmp.lt.s32.totalorder %s59_s12, %s59_s12 }
  0x1e   :  { %p2939_p11 = scmp.ne.s32.totalorder %s59_s12, %s2938_s1  ;;  %p2944_p13 = scmp.lt.s32.totalorder %s2938_s1, %s2938_s1 }
  0x20   :  { %p2945_p0 = por %p2944_p13, %p2943_p12 }
  0x22   :  { %p2946_p1 = pnand %p2945_p0, %p2939_p11 }
  0x24   :  { %2949 = shalt.err (!%p2946_p1)
}
  0x25   :  { %61 = dma.hbm_to_vmem [thread:$0]  %s3257_s3, 32, %s59_s12, [#allocation10]  }
  0x26   :  { %s2950_s26 = scalar_lea.hbm %s3254_s0, 4096 }
  0x27   :  { %p2951_p2 = scmp.ne.s32.totalorder %s3254_s0, %s2950_s26  ;;  %p2954_p3 = scmp.lt.u32.totalorder %s2950_s26, %s3254_s0 }
  0x29   :  { %p2956_p4 = pnand %p2954_p3, %p2951_p2 }
  0x2b   :  { %2959 = shalt.err (!%p2956_p4)
}
  0x2c   :  { %s2960_s7 = scalar_lea.vmem %s22_s14, 4096  ;;  %p2965_p6 = scmp.lt.s32.totalorder %s22_s14, %s22_s14 }
  0x2d   :  { %p2961_p5 = scmp.ne.s32.totalorder %s22_s14, %s2960_s7  ;;  %p2966_p7 = scmp.lt.s32.totalorder %s2960_s7, %s2960_s7 }
  0x2f   :  { %p2967_p8 = por %p2966_p7, %p2965_p6 }
  0x31   :  { %p2968_p9 = pnand %p2967_p8, %p2961_p5 }
  0x33   :  { %2971 = shalt.err (!%p2968_p9)
}
  0x34   :  { %s3075_s3 = smov 128   ;;  %s3076_s8 = smov 8  }
  0x35   :  { %27 = dma.hbm_to_vmem [thread:$0]  %s3254_s0, 4096, %s22_s14, [#allocation4], %s3075_s3, %s3075_s3, %s3076_s8  }
  0x36   :  { %s3077_s11 = smov [#allocation8]   ;;  %s3078_s13 = smov [#allocation11]  }
  0x37   :  { %s45_s12 = sshll.u32 %s3077_s11, 4  ;;  %s67_s15 = sshll.u32 %s3078_s13, 4  ;;  %s46_s12 = int_to_ptr.vmem [resolvable:$true] %s45_s12  ;;  %s68_s15 = int_to_ptr.vmem [resolvable:$true] %s67_s15 }
  0x38   :  { %s2972_s18 = scalar_lea.hbm %s3256_s2, 4096 }
  0x39   :  { %p2973_p10 = scmp.ne.s32.totalorder %s3256_s2, %s2972_s18  ;;  %p2976_p11 = scmp.lt.u32.totalorder %s2972_s18, %s3256_s2 }
  0x3b   :  { %p2978_p12 = pnand %p2976_p11, %p2973_p10 }
  0x3d   :  { %2981 = shalt.err (!%p2978_p12)
}
  0x3e   :  { %s2982_s0 = scalar_lea.vmem %s46_s12, 4096  ;;  %p2987_p0 = scmp.lt.s32.totalorder %s46_s12, %s46_s12 }
  0x3f   :  { %p2983_p13 = scmp.ne.s32.totalorder %s46_s12, %s2982_s0  ;;  %p2988_p1 = scmp.lt.s32.totalorder %s2982_s0, %s2982_s0 }
  0x41   :  { %p2989_p2 = por %p2988_p1, %p2987_p0 }
  0x43   :  { %p2990_p3 = pnand %p2989_p2, %p2983_p13 }
  0x45   :  { %2993 = shalt.err (!%p2990_p3)
}
  0x46   :  { %51 = dma.hbm_to_vmem [thread:$0]  %s3256_s2, 4096, %s46_s12, [#allocation7], %s3075_s3, %s3075_s3, %s3076_s8  }
  0x47   :  { %s2994_s25 = scalar_lea.hbm %s3258_s4, 4096 }
  0x48   :  { %p2995_p4 = scmp.ne.s32.totalorder %s3258_s4, %s2994_s25  ;;  %p2998_p5 = scmp.lt.u32.totalorder %s2994_s25, %s3258_s4 }
  0x4a   :  { %p3000_p6 = pnand %p2998_p5, %p2995_p4 }
  0x4c   :  { %3003 = shalt.err (!%p3000_p6)
}
  0x4d   :  { %s3004_s30 = scalar_lea.vmem %s68_s15, 4096  ;;  %p3009_p8 = scmp.lt.s32.totalorder %s68_s15, %s68_s15 }
  0x4e   :  { %p3005_p7 = scmp.ne.s32.totalorder %s68_s15, %s3004_s30  ;;  %p3010_p9 = scmp.lt.s32.totalorder %s3004_s30, %s3004_s30 }
  0x50   :  { %p3011_p10 = por %p3010_p9, %p3009_p8 }
  0x52   :  { %p3012_p11 = pnand %p3011_p10, %p3005_p7 }
  0x54   :  { %3015 = shalt.err (!%p3012_p11)
}
  0x55   :  { %73 = dma.hbm_to_vmem [thread:$0]  %s3258_s4, 4096, %s68_s15, [#allocation10], %s3075_s3, %s3075_s3, %s3076_s8  }
  0x56   :  { %s3079_s9 = smov [#allocation12]   ;;  %s3016_s13 = scalar_lea.hbm %s3259_s5, 32 }
  0x57   :  { %s80_s10 = sshll.u32 %s3079_s9, 4  ;;  %p3017_p12 = scmp.ne.s32.totalorder %s3259_s5, %s3016_s13  ;;  %s81_s10 = int_to_ptr.vmem [resolvable:$true] %s80_s10 }
  0x58   :  { %p3020_p13 = scmp.lt.u32.totalorder %s3016_s13, %s3259_s5 }
  0x5a   :  { %p3022_p0 = pnand %p3020_p13, %p3017_p12 }
  0x5c   :  { %3025 = shalt.err (!%p3022_p0)
}
  0x5d   :  { %s3026_s20 = scalar_lea.vmem %s81_s10, 32  ;;  %p3031_p2 = scmp.lt.s32.totalorder %s81_s10, %s81_s10 }
  0x5e   :  { %p3027_p1 = scmp.ne.s32.totalorder %s81_s10, %s3026_s20  ;;  %p3032_p3 = scmp.lt.s32.totalorder %s3026_s20, %s3026_s20 }
  0x60   :  { %p3033_p4 = por %p3032_p3, %p3031_p2 }
  0x62   :  { %p3034_p5 = pnand %p3033_p4, %p3027_p1 }
  0x64   :  { %3037 = shalt.err (!%p3034_p5)
}
  0x65   :  { %83 = dma.hbm_to_vmem [thread:$0]  %s3259_s5, 32, %s81_s10, [#allocation13]  }
  0x66   :  { %3060 = dma.done.wait [#allocation4], 4096  }
  0x67   :  { %3061 = vsyncadd [#allocation4], 4294963200 }
  0x68   :  { %3062 = dma.done.wait [#allocation7], 8192  }
  0x69   :  { %3063 = vsyncadd [#allocation7], 4294959104 }
  0x6a   :  { %3064 = dma.done.wait [#allocation10], 4128  }
  0x6b   :  { %3065 = vsyncadd [#allocation10], 4294963168 }
  0x6c   :  { %3066 = dma.done.wait [#allocation13], 32  }
  0x6d   :  { %3067 = vsyncadd [#allocation13], 4294967264  ;;  %v3080_v0 = vmov 0.0   ;;  %v3081_v1 = vmov 0   ;;  %v207_v2 = vld [vmem:[#allocation6 + $0x8] sm:$0xff]  ;;  %v209_v3 = vld [vmem:[#allocation6 + $0x18] sm:$0xff] }
  0x6e   :  { %302 = vmatprep.mubr.f32.mxu0 %v3080_v0  ;;  %2903 = vset.pattern.permute.xlu0 %v3081_v1  ;;  %v206_v4 = vld [vmem:[#allocation6] sm:$0xff]  ;;  %v2839_v5 = vpack.c.bf16 %v209_v3, %v207_v2  ;;  %v208_v6 = vld [vmem:[#allocation6 + $0x10] sm:$0xff]  ;;  %v211_v7 = vld [vmem:[#allocation6 + $0x28] sm:$0xff]  ;;  %vm3082_vm6 = vmmov 1   ;;  %s3083_s5 = smov [#allocation14]  }
  0x6f   :  { %398 = vmatprep.mubr.f32.mxu1 %v3080_v0  ;;  %v213_v8 = vld [vmem:[#allocation6 + $0x38] sm:$0xff]  ;;  %v2841_v9 = vpack.c.bf16 %v208_v6, %v206_v4  ;;  %v210_v11 = vld [vmem:[#allocation6 + $0x20] sm:$0xff]  ;;  %v212_v12 = vld [vmem:[#allocation6 + $0x30] sm:$0xff]  ;;  %s2827_s8 = sshll.u32 %s3083_s5, 4  ;;  %s2828_s8 = int_to_ptr.vmem [resolvable:$true] %s2827_s8 }
  0x70   :  { %v2843_v10 = vpack.c.bf16 %v213_v8, %v211_v7  ;;  %v215_v13 = vld [vmem:[#allocation6 + $0x48] sm:$0xff]  ;;  %2840 = vmatprep.subr.bf16.mxu0 %v2839_v5  ;;  %v217_v14 = vld [vmem:[#allocation6 + $0x58] sm:$0xff]  ;;  %2871 = vmatprep.subr.bf16.mxu1 %v2839_v5  ;;  %v2845_v15 = vpack.c.bf16 %v212_v12, %v210_v11  ;;  %v214_v17 = vld [vmem:[#allocation6 + $0x40] sm:$0xff]  ;;  %s3038_s21 = scalar_lea.vmem %s2828_s8, 128  ;;  %p3043_p7 = scmp.lt.s32.totalorder %s2828_s8, %s2828_s8 }
  0x71   :  { %2842 = vmatpush1.bf16.msra.mxu0 %v2841_v9  ;;  %2879 = vmatpush1.bf16.msra.mxu1 %v2841_v9  ;;  %v2847_v16 = vpack.c.bf16 %v217_v14, %v215_v13  ;;  %v216_v18 = vld [vmem:[#allocation6 + $0x50] sm:$0xff]  ;;  %v219_v19 = vld [vmem:[#allocation6 + $0x68] sm:$0xff]  ;;  %v221_v20 = vld [vmem:[#allocation6 + $0x78] sm:$0xff]  ;;  %p3039_p6 = scmp.ne.s32.totalorder %s2828_s8, %s3038_s21  ;;  %p3044_p8 = scmp.lt.s32.totalorder %s3038_s21, %s3038_s21 }
  0x72   :  { %2844 = vmatprep.subr.bf16.mxu0 %v2843_v10  ;;  %2872 = vmatprep.subr.bf16.mxu1 %v2843_v10  ;;  %v2849_v21 = vpack.c.bf16 %v216_v18, %v214_v17  ;;  %v2851_v22 = vpack.c.bf16 %v221_v20, %v219_v19  ;;  %v218_v23 = vld [vmem:[#allocation6 + $0x60] sm:$0xff]  ;;  %v220_v24 = vld [vmem:[#allocation6 + $0x70] sm:$0xff]  ;;  %v223_v25 = vld [vmem:[#allocation6 + $0x88] sm:$0xff] }
  0x73   :  { %v225_v26 = vld [vmem:[#allocation6 + $0x98] sm:$0xff]  ;;  %v495_v27 = vld [vmem:[#allocation8] sm:$0xff]  ;;  %v2853_v28 = vpack.c.bf16 %v220_v24, %v218_v23  ;;  %v224_v31 = vld [vmem:[#allocation6 + $0x90] sm:$0xff]  ;;  %p3045_p9 = por %p3044_p8, %p3043_p7 }
  0x74   :  { %530 = vperm.xlu0 %2903, %v495_v27   ;;  %v2855_v29 = vpack.c.bf16 %v225_v26, %v223_v25  ;;  %v222_v30 = vld [vmem:[#allocation6 + $0x80] sm:$0xff]  ;;  %v227_v33 = vld [vmem:[#allocation6 + $0xa8] sm:$0xff]  ;;  %v229_v34 = vld [vmem:[#allocation6 + $0xb8] sm:$0xff] }
  0x75   :  { %2846 = vmatpush1.bf16.msra.mxu0 %v2845_v15  ;;  %2880 = vmatpush1.bf16.msra.mxu1 %v2845_v15  ;;  %v955_v32 = vld [vmem:[#allocation11] sm:$0xff]  ;;  %v2857_v35 = vpack.c.bf16 %v224_v31, %v222_v30  ;;  %v2859_v36 = vpack.c.bf16 %v229_v34, %v227_v33  ;;  %v228_v38 = vld [vmem:[#allocation6 + $0xb0] sm:$0xff]  ;;  %v233_v40 = vld [vmem:[#allocation6 + $0xd8] sm:$0xff]  ;;  %p3046_p10 = pnand %p3045_p9, %p3039_p6 }
  0x76   :  { %2848 = vmatprep.subr.bf16.mxu0 %v2847_v16  ;;  %2873 = vmatprep.subr.bf16.mxu1 %v2847_v16  ;;  %v226_v37 = vld [vmem:[#allocation6 + $0xa0] sm:$0xff]  ;;  %v231_v39 = vld [vmem:[#allocation6 + $0xc8] sm:$0xff]  ;;  %v232_v44 = vld [vmem:[#allocation6 + $0xd0] sm:$0xff] }
  0x77   :  { %v2861_v41 = vpack.c.bf16 %v228_v38, %v226_v37  ;;  %v2863_v42 = vpack.c.bf16 %v233_v40, %v231_v39  ;;  %v230_v43 = vld [vmem:[#allocation6 + $0xc0] sm:$0xff]  ;;  %v235_v45 = vld [vmem:[#allocation6 + $0xe8] sm:$0xff]  ;;  %v237_v46 = vld [vmem:[#allocation6 + $0xf8] sm:$0xff] }
  0x78   :  { %989 = vperm.xlu0 %2903, %v955_v32   ;;  %v2865_v47 = vpack.c.bf16 %v232_v44, %v230_v43  ;;  %v2867_v48 = vpack.c.bf16 %v237_v46, %v235_v45  ;;  %v234_v49 = vld [vmem:[#allocation6 + $0xe0] sm:$0xff]  ;;  %v236_v50 = vld [vmem:[#allocation6 + $0xf0] sm:$0xff]  ;;  %v175_v54 = vld [vmem:[#allocation3 + $0x8] sm:$0xff] }
  0x79   :  { %2850 = vmatpush1.bf16.msra.mxu0 %v2849_v21  ;;  %2881 = vmatpush1.bf16.msra.mxu1 %v2849_v21  ;;  %v2869_v51 = vpack.c.bf16 %v236_v50, %v234_v49  ;;  %v174_v52 = vld [vmem:[#allocation3] sm:$0xff]  ;;  %v191_v55 = vld [vmem:[#allocation3 + $0x88] sm:$0xff]  ;;  %v176_v56 = vld [vmem:[#allocation3 + $0x10] sm:$0xff]  ;;  %v689_v21 = vlaneseq }
  0x7a   :  { %2852 = vmatprep.subr.bf16.mxu0 %v2851_v22  ;;  %2874 = vmatprep.subr.bf16.mxu1 %v2851_v22  ;;  %v190_v53 = vld [vmem:[#allocation3 + $0x80] sm:$0xff]  ;;  %v192_v57 = vld [vmem:[#allocation3 + $0x90] sm:$0xff]  ;;  %v177_v58 = vld [vmem:[#allocation3 + $0x18] sm:$0xff] }
  0x7b   :  { %v193_v59 = vld [vmem:[#allocation3 + $0x98] sm:$0xff]  ;;  %v178_v60 = vld [vmem:[#allocation3 + $0x20] sm:$0xff]  ;;  %v179_v62 = vld [vmem:[#allocation3 + $0x28] sm:$0xff]  ;;  %v3232_v22 = vshrl.u32 %v689_v21, 7 }
  0x7c   :  { %v194_v61 = vld [vmem:[#allocation3 + $0xa0] sm:$0xff]  ;;  %v195_v63 = vld [vmem:[#allocation3 + $0xa8] sm:$0xff]  ;;  %v180_v1 = vld [vmem:[#allocation3 + $0x30] sm:$0xff] }
  0x7d   :  { %2854 = vmatpush1.bf16.msra.mxu0 %v2853_v28  ;;  %2882 = vmatpush1.bf16.msra.mxu1 %v2853_v28  ;;  %v196_v2 = vld [vmem:[#allocation3 + $0xb0] sm:$0xff]  ;;  %v181_v3 = vld [vmem:[#allocation3 + $0x38] sm:$0xff]  ;;  %v182_v5 = vld [vmem:[#allocation3 + $0x40] sm:$0xff]  ;;  %v691_v23 = vsub.s32 0, %v3232_v22  ;;  %vm2815_vm10 = vcmp.eq.s32.totalorder %v3232_v22, 0 }
  0x7e   :  { %2856 = vmatprep.subr.bf16.mxu0 %v2855_v29  ;;  %2875 = vmatprep.subr.bf16.mxu1 %v2855_v29  ;;  %v197_v4 = vld [vmem:[#allocation3 + $0xb8] sm:$0xff]  ;;  %v198_v6 = vld [vmem:[#allocation3 + $0xc0] sm:$0xff]  ;;  %v183_v7 = vld [vmem:[#allocation3 + $0x48] sm:$0xff] }
  0x7f   :  { %v199_v8 = vld [vmem:[#allocation3 + $0xc8] sm:$0xff]  ;;  %v184_v9 = vld [vmem:[#allocation3 + $0x50] sm:$0xff]  ;;  %v185_v11 = vld [vmem:[#allocation3 + $0x58] sm:$0xff] }
  0x80   :  { %v200_v10 = vld [vmem:[#allocation3 + $0xd0] sm:$0xff]  ;;  %v201_v12 = vld [vmem:[#allocation3 + $0xd8] sm:$0xff]  ;;  %v186_v13 = vld [vmem:[#allocation3 + $0x60] sm:$0xff] }
  0x81   :  { %2858 = vmatpush1.bf16.msra.mxu0 %v2857_v35  ;;  %2883 = vmatpush1.bf16.msra.mxu1 %v2857_v35  ;;  %v202_v14 = vld [vmem:[#allocation3 + $0xe0] sm:$0xff]  ;;  %v187_v15 = vld [vmem:[#allocation3 + $0x68] sm:$0xff]  ;;  %v188_v17 = vld [vmem:[#allocation3 + $0x70] sm:$0xff] }
  0x82   :  { %2860 = vmatprep.subr.bf16.mxu0 %v2859_v36  ;;  %2876 = vmatprep.subr.bf16.mxu1 %v2859_v36  ;;  %v203_v16 = vld [vmem:[#allocation3 + $0xe8] sm:$0xff]  ;;  %v204_v18 = vld [vmem:[#allocation3 + $0xf0] sm:$0xff]  ;;  %v189_v19 = vld [vmem:[#allocation3 + $0x78] sm:$0xff] }
  0x83   :  { %v205_v20 = vld [vmem:[#allocation3 + $0xf8] sm:$0xff]  ;;  %v527_v24 = vld [vmem:[#allocation9] sm:$0x3]  ;;  %v987_v45 = vld [vmem:[#allocation12] sm:$0x3] }
  0x84   :  { %v692_v25 = vrot.slane %v527_v24, %v691_v23  ;;  %v1087_v50 = vrot.slane %v987_v45, %v691_v23 }
  0x85   :  { %2862 = vmatpush1.bf16.msra.mxu0 %v2861_v41  ;;  %2884 = vmatpush1.bf16.msra.mxu1 %v2861_v41 }
  0x86   :  { %2864 = vmatprep.subr.bf16.mxu0 %v2863_v42  ;;  %2877 = vmatprep.subr.bf16.mxu1 %v2863_v42 }
  0x89   :  { %2866 = vmatpush1.bf16.msra.mxu0 %v2865_v47  ;;  %2885 = vmatpush1.bf16.msra.mxu1 %v2865_v47  ;;  %v3235_v47 = vand.u32 127, %v689_v21 }
  0x8a   :  { %2868 = vmatprep.subr.bf16.mxu0 %v2867_v48  ;;  %2878 = vmatprep.subr.bf16.mxu1 %v2867_v48 }
  0x8b   :  { %vm1230_vm1 = vcmp.gt.s32.totalorder %v3235_v47, %v3232_v22  ;;  %vm1390_vm2 = vcmp.lt.s32.totalorder %v3235_v47, 8  ;;  %vm2816_vm11 = vcmp.eq.s32.totalorder %v3235_v47, 0 }
  0x8c   :  { %vm1392_vm5 = vmand %vm1230_vm1, %vm1390_vm2 }
  0x8d   :  { %2870 = vmatpush1.bf16.msra.mxu0 %v2869_v51  ;;  %2886 = vmatpush1.bf16.msra.mxu1 %v2869_v51  ;;  %vm2817_vm12 = vmand %vm2815_vm10, %vm2816_vm11 }
  0x90   :  { %303 = vmatmul.mubr.f32.vlgmr.msra.gmra.mrb[0].mxu0 %v174_v52  ;;  %399 = vmatmul.mubr.f32.vlgmr.msra.gmra.mrb[0].mxu1 %v190_v53 }
  0x91   :  { %308 = vmatprep.mubr.f32.mxu0 %v3080_v0  ;;  %404 = vmatprep.mubr.f32.mxu1 %v3080_v0 }
  0x94   :  { %309 = vmatmul.mubr.f32.gmra.mrb[2].mxu0 %v175_v54  ;;  %405 = vmatmul.mubr.f32.gmra.mrb[2].mxu1 %v191_v55 }
  0x95   :  { %314 = vmatprep.mubr.f32.mxu0 %v3080_v0  ;;  %410 = vmatprep.mubr.f32.mxu1 %v3080_v0 }
  0x98   :  { %315 = vmatmul.mubr.f32.gmra.mrb[4].mxu0 %v176_v56  ;;  %411 = vmatmul.mubr.f32.gmra.mrb[4].mxu1 %v192_v57 }
  0x99   :  { %320 = vmatprep.mubr.f32.mxu0 %v3080_v0  ;;  %416 = vmatprep.mubr.f32.mxu1 %v3080_v0 }
  0x9c   :  { %321 = vmatmul.mubr.f32.gmra.mrb[6].mxu0 %v177_v58  ;;  %417 = vmatmul.mubr.f32.gmra.mrb[6].mxu1 %v193_v59 }
  0x9d   :  { %326 = vmatprep.mubr.f32.mxu0 %v3080_v0  ;;  %422 = vmatprep.mubr.f32.mxu1 %v3080_v0 }
  0xa0   :  { %327 = vmatmul.mubr.f32.gmra.mrb[8].mxu0 %v178_v60  ;;  %423 = vmatmul.mubr.f32.gmra.mrb[8].mxu1 %v194_v61 }
  0xa1   :  { %332 = vmatprep.mubr.f32.mxu0 %v3080_v0  ;;  %428 = vmatprep.mubr.f32.mxu1 %v3080_v0 }
  0xa4   :  { %333 = vmatmul.mubr.f32.gmra.mrb[10].mxu0 %v179_v62  ;;  %429 = vmatmul.mubr.f32.gmra.mrb[10].mxu1 %v195_v63 }
  0xa5   :  { %338 = vmatprep.mubr.f32.mxu0 %v3080_v0  ;;  %434 = vmatprep.mubr.f32.mxu1 %v3080_v0 }
  0xa8   :  { %339 = vmatmul.mubr.f32.gmra.mrb[12].mxu0 %v180_v1  ;;  %435 = vmatmul.mubr.f32.gmra.mrb[12].mxu1 %v196_v2 }
  0xa9   :  { %344 = vmatprep.mubr.f32.mxu0 %v3080_v0  ;;  %440 = vmatprep.mubr.f32.mxu1 %v3080_v0 }
  0xac   :  { %345 = vmatmul.mubr.f32.gmra.mrb[14].mxu0 %v181_v3  ;;  %441 = vmatmul.mubr.f32.gmra.mrb[14].mxu1 %v197_v4 }
  0xad   :  { %350 = vmatprep.mubr.f32.mxu0 %v3080_v0  ;;  %446 = vmatprep.mubr.f32.mxu1 %v3080_v0 }
  0xb0   :  { %351 = vmatmul.mubr.f32.gmra.mrb[16].mxu0 %v182_v5  ;;  %447 = vmatmul.mubr.f32.gmra.mrb[16].mxu1 %v198_v6 }
  0xb1   :  { %356 = vmatprep.mubr.f32.mxu0 %v3080_v0  ;;  %452 = vmatprep.mubr.f32.mxu1 %v3080_v0 }
  0xb4   :  { %357 = vmatmul.mubr.f32.gmra.mrb[18].mxu0 %v183_v7  ;;  %453 = vmatmul.mubr.f32.gmra.mrb[18].mxu1 %v199_v8 }
  0xb5   :  { %362 = vmatprep.mubr.f32.mxu0 %v3080_v0  ;;  %458 = vmatprep.mubr.f32.mxu1 %v3080_v0 }
  0xb8   :  { %363 = vmatmul.mubr.f32.gmra.mrb[20].mxu0 %v184_v9  ;;  %459 = vmatmul.mubr.f32.gmra.mrb[20].mxu1 %v200_v10 }
  0xb9   :  { %368 = vmatprep.mubr.f32.mxu0 %v3080_v0  ;;  %464 = vmatprep.mubr.f32.mxu1 %v3080_v0 }
  0xbc   :  { %369 = vmatmul.mubr.f32.gmra.mrb[22].mxu0 %v185_v11  ;;  %465 = vmatmul.mubr.f32.gmra.mrb[22].mxu1 %v201_v12 }
  0xbd   :  { %374 = vmatprep.mubr.f32.mxu0 %v3080_v0  ;;  %470 = vmatprep.mubr.f32.mxu1 %v3080_v0 }
  0xc0   :  { %375 = vmatmul.mubr.f32.gmra.mrb[24].mxu0 %v186_v13  ;;  %471 = vmatmul.mubr.f32.gmra.mrb[24].mxu1 %v202_v14 }
  0xc1   :  { %380 = vmatprep.mubr.f32.mxu0 %v3080_v0  ;;  %476 = vmatprep.mubr.f32.mxu1 %v3080_v0 }
  0xc4   :  { %381 = vmatmul.mubr.f32.gmra.mrb[26].mxu0 %v187_v15  ;;  %477 = vmatmul.mubr.f32.gmra.mrb[26].mxu1 %v203_v16 }
  0xc5   :  { %386 = vmatprep.mubr.f32.mxu0 %v3080_v0  ;;  %482 = vmatprep.mubr.f32.mxu1 %v3080_v0 }
  0xc8   :  { %387 = vmatmul.mubr.f32.gmra.mrb[28].mxu0 %v188_v17  ;;  %483 = vmatmul.mubr.f32.gmra.mrb[28].mxu1 %v204_v18 }
  0xc9   :  { %392 = vmatprep.mubr.f32.mxu0 %v3080_v0  ;;  %488 = vmatprep.mubr.f32.mxu1 %v3080_v0 }
  0xcc   :  { %393 = vmatmul.mubr.f32.gmra.mrb[30].mxu0 %v189_v19  ;;  %489 = vmatmul.mubr.f32.gmra.mrb[30].mxu1 %v205_v20 }
  0xf3   :  { %v531_v26 = vpop.permute.xlu0 %530 }
  0xf4   :  { %v699_v27 = vadd.f32 %v692_v25, %v531_v26 }
  0xf7   :  { %v990_v53 = vpop.permute.xlu0 %989 }
  0xf8   :  { %vm1092_vm4 = vcmp.eq.s32.totalorder %v990_v53, %v1087_v50 }
  0xf9   :  { %vm2160_vm7 = vmxor %vm1092_vm4, %vm3082_vm6 }
  0xfa   :  { %vm1456_vm8 = vmand %vm1392_vm5, %vm1092_vm4 }
  0xfb   :  { %vm2224_vm9 = vmand %vm1392_vm5, %vm2160_vm7 }
 0x163   :  { %v304_v28 = vpop.f32.mrb[0].mxu0  ;;  %v400_v31 = vpop.f32.mrb[0].mxu1 }
 0x164   :  { %v763_v29 = vmul.f32 2.0, %v304_v28  ;;  %v306_v30 = vpop.f32.mrb[1].mxu0  ;;  %v402_v32 = vpop.f32.mrb[1].mxu1 }
 0x166   :  { %v827_v33 = vsub.f32 %v699_v27, %v763_v29 }
 0x167   :  { %v310_v0 = vpop.f32.mrb[2].mxu0  ;;  %v406_v35 = vpop.f32.mrb[2].mxu1 }
 0x168   :  { %v891_v34 = vmax.f32 %v827_v33, 0.0  ;;  %v312_v36 = vpop.f32.mrb[3].mxu0  ;;  %v408_v37 = vpop.f32.mrb[3].mxu1 }
 0x16a   :  { %2904 = vrsqrt.f32 %v891_v34  ;;  %vm1586_vm0 = vcmp.eq.f32.partialorder %v891_v34, inf  ;;  %v1589_v56 = vand.u32 2147483648, %v891_v34  ;;  %vm1588_vm3 = vcmp.eq.f32.partialorder %v891_v34, 0.0 }
 0x16b   :  { %v316_v38 = vpop.f32.mrb[4].mxu0  ;;  %v412_v39 = vpop.f32.mrb[4].mxu1  ;;  %v1520_v7 = vsel %vm1456_vm8, %v891_v34, 0.0 }
 0x16c   :  { %v318_v40 = vpop.f32.mrb[5].mxu0  ;;  %v414_v41 = vpop.f32.mrb[5].mxu1 }
 0x16f   :  { %v322_v42 = vpop.f32.mrb[6].mxu0  ;;  %v418_v43 = vpop.f32.mrb[6].mxu1 }
 0x170   :  { %v324_v44 = vpop.f32.mrb[7].mxu0  ;;  %v420_v46 = vpop.f32.mrb[7].mxu1 }
 0x173   :  { %v328_v48 = vpop.f32.mrb[8].mxu0  ;;  %v424_v51 = vpop.f32.mrb[8].mxu1 }
 0x174   :  { %v2905_v49 = vpop.eup %2904  ;;  %v330_v52 = vpop.f32.mrb[9].mxu0 }
 0x175   :  { %v1585_v54 = vmul.f32 %v2905_v49, %v891_v34  ;;  %v426_v55 = vpop.f32.mrb[9].mxu1 }
 0x177   :  { %v1587_v57 = vsel %vm1586_vm0, %v891_v34, %v1585_v54  ;;  %v334_v58 = vpop.f32.mrb[10].mxu0  ;;  %v430_v60 = vpop.f32.mrb[10].mxu1 }
 0x178   :  { %v1590_v59 = vsel %vm1588_vm3, %v1589_v56, %v1587_v57  ;;  %v336_v61 = vpop.f32.mrb[11].mxu0  ;;  %v432_v63 = vpop.f32.mrb[11].mxu1 }
 0x179   :  { %v2032_v62 = vsub.f32 0.5, %v1590_v59 }
 0x17b   :  { %v2096_v1 = vmax.f32 %v2032_v62, 0.0  ;;  %v340_v2 = vpop.f32.mrb[12].mxu0  ;;  %v436_v3 = vpop.f32.mrb[12].mxu1 }
 0x17c   :  { %v342_v4 = vpop.f32.mrb[13].mxu0  ;;  %v438_v6 = vpop.f32.mrb[13].mxu1 }
 0x17d   :  { %v2288_v5 = vmul.f32 %v2096_v1, %v2096_v1 }
 0x17f   :  { %v2352_v8 = vsel %vm2224_vm9, %v2288_v5, 0.0  ;;  %v346_v9 = vpop.f32.mrb[14].mxu0  ;;  %v442_v11 = vpop.f32.mrb[14].mxu1 }
 0x180   :  { %v2480_v10 = vadd.f32 %v2352_v8, %v1520_v7  ;;  %v348_v12 = vpop.f32.mrb[15].mxu0  ;;  %v444_v13 = vpop.f32.mrb[15].mxu1 }
 0x182   :  { %2802 = vadd.xlane.f32.xlu1 %v2480_v10 }
 0x183   :  { %v352_v14 = vpop.f32.mrb[16].mxu0  ;;  %v448_v15 = vpop.f32.mrb[16].mxu1 }
 0x184   :  { %v354_v16 = vpop.f32.mrb[17].mxu0  ;;  %v450_v17 = vpop.f32.mrb[17].mxu1 }
 0x187   :  { %v358_v18 = vpop.f32.mrb[18].mxu0  ;;  %v454_v19 = vpop.f32.mrb[18].mxu1 }
 0x188   :  { %v360_v20 = vpop.f32.mrb[19].mxu0  ;;  %v456_v21 = vpop.f32.mrb[19].mxu1 }
 0x18b   :  { %v364_v23 = vpop.f32.mrb[20].mxu0  ;;  %v460_v24 = vpop.f32.mrb[20].mxu1 }
 0x18c   :  { %v366_v25 = vpop.f32.mrb[21].mxu0  ;;  %v462_v26 = vpop.f32.mrb[21].mxu1 }
 0x18f   :  { %v370_v27 = vpop.f32.mrb[22].mxu0  ;;  %v466_v28 = vpop.f32.mrb[22].mxu1 }
 0x190   :  { %v372_v29 = vpop.f32.mrb[23].mxu0  ;;  %v468_v30 = vpop.f32.mrb[23].mxu1 }
 0x193   :  { %v376_v31 = vpop.f32.mrb[24].mxu0  ;;  %v472_v32 = vpop.f32.mrb[24].mxu1 }
 0x194   :  { %v378_v33 = vpop.f32.mrb[25].mxu0  ;;  %v474_v0 = vpop.f32.mrb[25].mxu1 }
 0x197   :  { %v382_v34 = vpop.f32.mrb[26].mxu0  ;;  %v478_v35 = vpop.f32.mrb[26].mxu1 }
 0x198   :  { %v384_v36 = vpop.f32.mrb[27].mxu0  ;;  %v480_v37 = vpop.f32.mrb[27].mxu1 }
 0x19b   :  { %v388_v38 = vpop.f32.mrb[28].mxu0  ;;  %v484_v39 = vpop.f32.mrb[28].mxu1 }
 0x19c   :  { %v390_v40 = vpop.f32.mrb[29].mxu0  ;;  %v486_v41 = vpop.f32.mrb[29].mxu1 }
 0x19f   :  { %v394_v42 = vpop.f32.mrb[30].mxu0  ;;  %v490_v43 = vpop.f32.mrb[30].mxu1 }
 0x1a0   :  { %v396_v44 = vpop.f32.mrb[31].mxu0  ;;  %v492_v45 = vpop.f32.mrb[31].mxu1 }
 0x20f   :  { %v2803_v46 = vpop.xlane.xlu1 %2802 }
 0x210   :  { %v2804_v48 = vrot.slane %v2803_v46, 4 }
 0x212   :  { %v2805_v49 = vadd.f32 %v2804_v48, %v2803_v46 }
 0x214   :  { %v2806_v50 = vrot.slane %v2805_v49, 2 }
 0x216   :  { %v2807_v51 = vadd.f32 %v2806_v50, %v2805_v49 }
 0x218   :  { %v2808_v52 = vrot.slane %v2807_v51, 1 }
 0x21a   :  { %v2809_v53 = vadd.f32 %v2808_v52, %v2807_v51 }
 0x21c   :  { %2887 = vpush %v2809_v53 }
 0x24d   :  { %s2888_s15 = spop %2887 }
 0x24e   :  { %v2818_v54 = vstv %s2888_s15 }
 0x24f   :  { %v2819_v55 = vsel %vm2817_vm12, %v2818_v54, 0.0 }
 0x250   :  { %2820 = vst [vmem:[#allocation14] sm:$0xff] %v2819_v55 }
 0x251   :  { %3049 = shalt.err (!%p3046_p10)
}
 0x252   :  { %s3050_s14 = scalar_lea.hbm %s3260_s6, 128 }
 0x253   :  { %p3051_p11 = scmp.ne.s32.totalorder %s3260_s6, %s3050_s14  ;;  %p3054_p12 = scmp.lt.u32.totalorder %s3050_s14, %s3260_s6 }
 0x255   :  { %p3056_p13 = pnand %p3054_p12, %p3051_p11 }
 0x257   :  { %3059 = shalt.err (!%p3056_p13)
}
 0x258   :  { %2830 = dma.vmem_to_hbm [thread:$0]  %s2828_s8, 128, %s3260_s6, [#allocation5]  }
 0x259   :  { %3068 = dma.done.wait [#allocation5], 128  }
 0x25a   :  { %3069 = vsyncadd [#allocation5], 4294967168 }
 0x25b   :  { %2834 = vsyncpa [#allocation4], 1 }
 0x25c   :  { %2835 = vsyncpa [#allocation7], 1 }
 0x25d   :  { %2836 = vsyncpa [#allocation10], 1 }
 0x25e   :  { %2837 = vsyncpa [#allocation13], 1 }
 0x25f   :  { %2838 = vsyncpa [#allocation5], 1 }

</bundles_post_ra>
